<compile_context>
chip_gen: v6e
topology: v6e:2x2x1
jax: 0.10.0
libtpu: 0.0.40
codegen_flags: <defaults>
</compile_context>

<pallas_src>
import functools

import jax
import jax.numpy as jnp
from jax.experimental import pallas as pl
from jax.experimental.pallas import tpu as pltpu


def _dwconv_kernel(x_ref, halo_ref, wb_ref, o_ref, xpad_ref, *, C):
    # x_ref:    (1, tH, WC)    core rows of one H-tile (channels folded on lanes)
    # halo_ref: (1, 1, 2, WC)  row above / row below this tile (zeros at image edge)
    # wb_ref:   (10, WC)       rows 0..8 = 3x3 taps pre-tiled across W with the
    #                          column-edge zeros folded in; row 9 = bias
    # o_ref:    (1, tH, WC)
    # xpad_ref: (tH+2, WC) f32 scratch — tile with a 1-row halo top/bottom
    tH, WC = o_ref.shape[1], o_ref.shape[2]

    # Stage the tile with its halo rows once; every vertical (oh) tap is then a
    # cheap shifted static-slice load instead of a sublane roll + row mask.
    halo = halo_ref[0, 0]                                   # (2, WC)
    xpad_ref[0:1, :] = halo[0:1, :].astype(jnp.float32)     # row above tile
    xpad_ref[1:tH + 1, :] = x_ref[0].astype(jnp.float32)    # core rows
    xpad_ref[tH + 1:tH + 2, :] = halo[1:2, :].astype(jnp.float32)  # row below

    wb = wb_ref[...].astype(jnp.float32)                    # (10, WC)

    # Bias folded into the accumulator init (no extra full-tile add).
    acc = jnp.broadcast_to(wb[9:10, :], (tH, WC))

    # 3x3 depthwise conv = 9 shifted views, each scaled by a per-channel tap.
    for oh in (0, 1, 2):                                    # oh == kh
        xr = xpad_ref[oh:oh + tH, :]                        # rows h + kh - 1
        for ow in (-1, 0, 1):                               # ow == kw - 1
            if ow == 0:
                xs = xr
            else:
                # Lane shift by C (XLU).  Wrapped edge lanes contribute zero
                # because those lanes are zeroed in the pre-tiled tap weights.
                xs = pltpu.roll(xr, shift=(-ow * C) % WC, axis=1)
            acc = acc + xs * wb[oh * 3 + (ow + 1):oh * 3 + (ow + 2), :]

    o_ref[0] = acc.astype(o_ref.dtype)


def _pick_tile_h(H, WC, itemsize, target_bytes=1 << 20):
    """Largest multiple-of-8 divisor of H whose block stays <= ~1 MiB."""
    if H % 8 != 0:
        return H
    cands = [t for t in range(8, H + 1, 8) if H % t == 0]
    fits = [t for t in cands if t * WC * itemsize <= target_bytes]
    return max(fits) if fits else min(cands)


def dwconv_seq(x, weight, bias, H, W, tile_h=None):
    """x: (B, N, C) with N == H*W; weight: (3, 3, C); bias: (C,). Returns (B, N, C)."""
    B, N, C = x.shape
    assert N == H * W, "N must equal H*W"
    WC = W * C
    # TODO(synk): if W*C is not a multiple of 128, pad C (not W) in the wrapper
    # so the folded lane axis stays dense (masked vst.msk stores are ~4x slower).

    # (B, N, C) -> (B, H, W*C): contiguous reshape, no data movement.
    x_f = x.reshape(B, H, WC)

    if tile_h is None:
        tile_h = _pick_tile_h(H, WC, x.dtype.itemsize)
    assert H % tile_h == 0, "tile_h must divide H"
    nH = H // tile_h

    # --- taps + bias, pre-tiled across W on the folded lane axis -------------
    # Column-edge zeroing folded into the taps: ow=-1 taps are zero on lanes
    # [0, C) (left image edge wraps there after the lane roll), ow=+1 taps are
    # zero on lanes [WC-C, WC) (right image edge).
    w_f = jnp.tile(weight.reshape(3, 3, 1, C), (1, 1, W, 1)).reshape(3, 3, WC)
    lane = jnp.arange(WC)
    w_f = w_f.at[:, 0, :].mul((lane >= C).astype(w_f.dtype))
    w_f = w_f.at[:, 2, :].mul((lane < WC - C).astype(w_f.dtype))
    wb = jnp.concatenate(
        [w_f.reshape(9, WC), jnp.tile(bias, W)[None, :]], axis=0
    ).astype(jnp.float32)                                    # (10, WC)

    # --- per-tile halo rows (row above / below each H-tile; zeros at edges) --
    zrow = jnp.zeros((B, 1, WC), x.dtype)
    if nH > 1:
        tops = jnp.concatenate([zrow, x_f[:, tile_h - 1:H - 1:tile_h, :]], axis=1)
        bots = jnp.concatenate([x_f[:, tile_h:H:tile_h, :], zrow], axis=1)
    else:
        tops, bots = zrow, zrow
    halo = jnp.stack([tops, bots], axis=2)                   # (B, nH, 2, WC)

    # --- VMEM budget (double-buffered in/out blocks + halo + consts + scratch)
    blk_bytes = tile_h * WC * x.dtype.itemsize
    need = (2 * 2 * blk_bytes
            + 2 * 2 * WC * x.dtype.itemsize
            + 2 * 10 * WC * 4
            + (tile_h + 2) * WC * 4)
    vmem_limit = min(max(2 * need + (4 << 20), 8 << 20), 64 << 20)

    kernel = functools.partial(_dwconv_kernel, C=C)

    out = pl.pallas_call(
        kernel,
        out_shape=jax.ShapeDtypeStruct((B, H, WC), x.dtype),
        grid=(B, nH),
        in_specs=[
            pl.BlockSpec((1, tile_h, WC), lambda b, i: (b, i, 0)),
            pl.BlockSpec((1, 1, 2, WC), lambda b, i: (b, i, 0, 0)),
            pl.BlockSpec((10, WC), lambda b, i: (0, 0)),
        ],
        out_specs=pl.BlockSpec((1, tile_h, WC), lambda b, i: (b, i, 0)),
        scratch_shapes=[pltpu.VMEM((tile_h + 2, WC), jnp.float32)],
        compiler_params=pltpu.CompilerParams(
            dimension_semantics=("parallel", "parallel"),
            vmem_limit_bytes=vmem_limit),
    )(x_f, halo, wb)

    return out.reshape(B, N, C)


def _reference(x, weight, bias, H, W):
    """Pure-JAX reference mirroring the PyTorch NCHW depthwise conv."""
    B, N, C = x.shape
    x_nchw = jnp.transpose(x, (0, 2, 1)).reshape(B, C, H, W)
    w_oihw = jnp.transpose(weight, (2, 0, 1))[:, None, :, :]       # (C,1,3,3)
    y = jax.lax.conv_general_dilated(
        x_nchw, w_oihw, window_strides=(1, 1), padding=((1, 1), (1, 1)),
        feature_group_count=C, dimension_numbers=("NCHW", "OIHW", "NCHW"))
    y = y + bias[None, :, None, None]
    return jnp.transpose(y.reshape(B, C, H * W), (0, 2, 1))


if __name__ == "__main__":
    # Small, module-consistent shapes: dim (=C) = 8, B = 2, H = W = 16, N = 256.
    # W*C = 128 -> exactly lane-dense.  tile_h=8 gives a 2x2 grid and exercises
    # the cross-tile halo path.
    B, C, H, W = 2, 8, 16, 16
    N = H * W

    key = jax.random.PRNGKey(0)
    kx, kw, kb = jax.random.split(key, 3)

    x = jax.random.normal(kx, (B, N, C), dtype=jnp.float32)
    # Deterministic init mimicking nn.Conv2d defaults (fan_in = 1*3*3 = 9).
    bound = 1.0 / (9.0 ** 0.5)
    weight = jax.random.uniform(kw, (3, 3, C), minval=-bound, maxval=bound,
                                dtype=jnp.float32)
    bias = jax.random.uniform(kb, (C,), minval=-bound, maxval=bound,
                              dtype=jnp.float32)

    out = dwconv_seq(x, weight, bias, H, W, tile_h=8)
    out = jax.block_until_ready(out)

    ref = _reference(x, weight, bias, H, W)
    assert out.shape == (B, N, C)
    assert jnp.allclose(out, ref, atol=1e-5, rtol=1e-5), "mismatch vs reference"

    print("KERNEL_OK")
</pallas_src>

<mosaic_0001>
module attributes {stable_mosaic.version = 11 : i64} {
  func.func @_dwconv_kernel(%arg0: i32, %arg1: i32, %arg2: memref<1x8x128xf32, #tpu.memory_space<vmem>>, %arg3: memref<1x1x2x128xf32, #tpu.memory_space<vmem>>, %arg4: memref<10x128xf32, #tpu.memory_space<vmem>>, %arg5: memref<1x8x128xf32, #tpu.memory_space<vmem>>, %arg6: memref<10x128xf32, #tpu.memory_space<vmem>>) attributes {dimension_semantics = [#tpu.dimension_semantics<parallel>, #tpu.dimension_semantics<parallel>], iteration_bounds = array<i64: 2, 2>, scalar_prefetch = 0 : i64, scratch_operands = 1 : i64, tpu.core_type = #tpu.core_type<tc>, window_params = [{transform_indices = @transform_0, window_bounds = array<i64: 1, 8, 128>}, {transform_indices = @transform_1, window_bounds = array<i64: 1, 1, 2, 128>}, {pipeline_mode = #tpu.pipeline_mode<synchronous>, transform_indices = @transform_2, window_bounds = array<i64: 10, 128>}, {transform_indices = @transform_3, window_bounds = array<i64: 1, 8, 128>}]} {
    %c0 = arith.constant 0 : index
    %c0_0 = arith.constant 0 : index
    %c0_1 = arith.constant 0 : index
    %c0_2 = arith.constant 0 : index
    %0 = vector.load %arg3[%c0, %c0_0, %c0_1, %c0_2] : memref<1x1x2x128xf32, #tpu.memory_space<vmem>>, vector<1x1x2x128xf32>
    %1 = vector.shape_cast %0 : vector<1x1x2x128xf32> to vector<2x128xf32>
    %2 = vector.extract_strided_slice %1 {offsets = [0, 0], sizes = [1, 128], strides = [1, 1]} : vector<2x128xf32> to vector<1x128xf32>
    %c0_3 = arith.constant 0 : index
    %c0_4 = arith.constant 0 : index
    %3 = vector.load %arg6[%c0_3, %c0_4] : memref<10x128xf32, #tpu.memory_space<vmem>>, vector<1x128xf32>
    tpu.vector_store %arg6[%c0_3, %c0_4], %2 {strides = array<i32>} : memref<10x128xf32, #tpu.memory_space<vmem>>, vector<1x128xf32>,
    %c0_5 = arith.constant 0 : index
    %c0_6 = arith.constant 0 : index
    %c0_7 = arith.constant 0 : index
    %4 = vector.load %arg2[%c0_5, %c0_6, %c0_7] : memref<1x8x128xf32, #tpu.memory_space<vmem>>, vector<1x8x128xf32>
    %5 = vector.shape_cast %4 : vector<1x8x128xf32> to vector<8x128xf32>
    %c1 = arith.constant 1 : index
    %c0_8 = arith.constant 0 : index
    %6 = vector.load %arg6[%c1, %c0_8] : memref<10x128xf32, #tpu.memory_space<vmem>>, vector<8x128xf32>
    tpu.vector_store %arg6[%c1, %c0_8], %5 {strides = array<i32>} : memref<10x128xf32, #tpu.memory_space<vmem>>, vector<8x128xf32>,
    %7 = vector.extract_strided_slice %1 {offsets = [1, 0], sizes = [1, 128], strides = [1, 1]} : vector<2x128xf32> to vector<1x128xf32>
    %c9 = arith.constant 9 : index
    %c0_9 = arith.constant 0 : index
    %8 = vector.load %arg6[%c9, %c0_9] : memref<10x128xf32, #tpu.memory_space<vmem>>, vector<1x128xf32>
    tpu.vector_store %arg6[%c9, %c0_9], %7 {strides = array<i32>} : memref<10x128xf32, #tpu.memory_space<vmem>>, vector<1x128xf32>,
    %c0_10 = arith.constant 0 : index
    %c0_11 = arith.constant 0 : index
    %9 = vector.load %arg4[%c0_10, %c0_11] : memref<10x128xf32, #tpu.memory_space<vmem>>, vector<10x128xf32>
    %10 = vector.extract_strided_slice %9 {offsets = [9, 0], sizes = [1, 128], strides = [1, 1]} : vector<10x128xf32> to vector<1x128xf32>
    %11 = vector.shape_cast %10 : vector<1x128xf32> to vector<1x128xf32>
    %12 = vector.broadcast %11 : vector<1x128xf32> to vector<8x128xf32>
    %c0_12 = arith.constant 0 : index
    %c0_13 = arith.constant 0 : index
    %13 = vector.load %arg6[%c0_12, %c0_13] : memref<10x128xf32, #tpu.memory_space<vmem>>, vector<8x128xf32>
    %c8_i32 = arith.constant 8 : i32
    %14 = tpu.dynamic_rotate %13 by %c8_i32 dim 1 : vector<8x128xf32>, i32 -> vector<8x128xf32>
    %15 = vector.extract_strided_slice %9 {offsets = [0, 0], sizes = [1, 128], strides = [1, 1]} : vector<10x128xf32> to vector<1x128xf32>
    %16 = vector.broadcast %15 : vector<1x128xf32> to vector<8x128xf32>
    %17 = arith.mulf %14, %16 : vector<8x128xf32>
    %18 = arith.addf %12, %17 : vector<8x128xf32>
    %19 = vector.extract_strided_slice %9 {offsets = [1, 0], sizes = [1, 128], strides = [1, 1]} : vector<10x128xf32> to vector<1x128xf32>
    %20 = vector.broadcast %19 : vector<1x128xf32> to vector<8x128xf32>
    %21 = arith.mulf %13, %20 : vector<8x128xf32>
    %22 = arith.addf %18, %21 : vector<8x128xf32>
    %c120_i32 = arith.constant 120 : i32
    %23 = tpu.dynamic_rotate %13 by %c120_i32 dim 1 : vector<8x128xf32>, i32 -> vector<8x128xf32>
    %24 = vector.extract_strided_slice %9 {offsets = [2, 0], sizes = [1, 128], strides = [1, 1]} : vector<10x128xf32> to vector<1x128xf32>
    %25 = vector.broadcast %24 : vector<1x128xf32> to vector<8x128xf32>
    %26 = arith.mulf %23, %25 : vector<8x128xf32>
    %27 = arith.addf %22, %26 : vector<8x128xf32>
    %c1_14 = arith.constant 1 : index
    %c0_15 = arith.constant 0 : index
    %28 = vector.load %arg6[%c1_14, %c0_15] : memref<10x128xf32, #tpu.memory_space<vmem>>, vector<8x128xf32>
    %c8_i32_16 = arith.constant 8 : i32
    %29 = tpu.dynamic_rotate %28 by %c8_i32_16 dim 1 : vector<8x128xf32>, i32 -> vector<8x128xf32>
    %30 = vector.extract_strided_slice %9 {offsets = [3, 0], sizes = [1, 128], strides = [1, 1]} : vector<10x128xf32> to vector<1x128xf32>
    %31 = vector.broadcast %30 : vector<1x128xf32> to vector<8x128xf32>
    %32 = arith.mulf %29, %31 : vector<8x128xf32>
    %33 = arith.addf %27, %32 : vector<8x128xf32>
    %34 = vector.extract_strided_slice %9 {offsets = [4, 0], sizes = [1, 128], strides = [1, 1]} : vector<10x128xf32> to vector<1x128xf32>
    %35 = vector.broadcast %34 : vector<1x128xf32> to vector<8x128xf32>
    %36 = arith.mulf %28, %35 : vector<8x128xf32>
    %37 = arith.addf %33, %36 : vector<8x128xf32>
    %c120_i32_17 = arith.constant 120 : i32
    %38 = tpu.dynamic_rotate %28 by %c120_i32_17 dim 1 : vector<8x128xf32>, i32 -> vector<8x128xf32>
    %39 = vector.extract_strided_slice %9 {offsets = [5, 0], sizes = [1, 128], strides = [1, 1]} : vector<10x128xf32> to vector<1x128xf32>
    %40 = vector.broadcast %39 : vector<1x128xf32> to vector<8x128xf32>
    %41 = arith.mulf %38, %40 : vector<8x128xf32>
    %42 = arith.addf %37, %41 : vector<8x128xf32>
    %c2 = arith.constant 2 : index
    %c0_18 = arith.constant 0 : index
    %43 = vector.load %arg6[%c2, %c0_18] : memref<10x128xf32, #tpu.memory_space<vmem>>, vector<8x128xf32>
    %c8_i32_19 = arith.constant 8 : i32
    %44 = tpu.dynamic_rotate %43 by %c8_i32_19 dim 1 : vector<8x128xf32>, i32 -> vector<8x128xf32>
    %45 = vector.extract_strided_slice %9 {offsets = [6, 0], sizes = [1, 128], strides = [1, 1]} : vector<10x128xf32> to vector<1x128xf32>
    %46 = vector.broadcast %45 : vector<1x128xf32> to vector<8x128xf32>
    %47 = arith.mulf %44, %46 : vector<8x128xf32>
    %48 = arith.addf %42, %47 : vector<8x128xf32>
    %49 = vector.extract_strided_slice %9 {offsets = [7, 0], sizes = [1, 128], strides = [1, 1]} : vector<10x128xf32> to vector<1x128xf32>
    %50 = vector.broadcast %49 : vector<1x128xf32> to vector<8x128xf32>
    %51 = arith.mulf %43, %50 : vector<8x128xf32>
    %52 = arith.addf %48, %51 : vector<8x128xf32>
    %c120_i32_20 = arith.constant 120 : i32
    %53 = tpu.dynamic_rotate %43 by %c120_i32_20 dim 1 : vector<8x128xf32>, i32 -> vector<8x128xf32>
    %54 = vector.extract_strided_slice %9 {offsets = [8, 0], sizes = [1, 128], strides = [1, 1]} : vector<10x128xf32> to vector<1x128xf32>
    %55 = vector.broadcast %54 : vector<1x128xf32> to vector<8x128xf32>
    %56 = arith.mulf %53, %55 : vector<8x128xf32>
    %57 = arith.addf %52, %56 : vector<8x128xf32>
    %c0_21 = arith.constant 0 : index
    %c0_22 = arith.constant 0 : index
    %c0_23 = arith.constant 0 : index
    %58 = vector.load %arg5[%c0_21, %c0_22, %c0_23] : memref<1x8x128xf32, #tpu.memory_space<vmem>>, vector<1x8x128xf32>
    %59 = vector.shape_cast %58 : vector<1x8x128xf32> to vector<8x128xf32>
    %60 = vector.shape_cast %57 : vector<8x128xf32> to vector<1x8x128xf32>
    tpu.vector_store %arg5[%c0_21, %c0_22, %c0_23], %60 {strides = array<i32>} : memref<1x8x128xf32, #tpu.memory_space<vmem>>, vector<1x8x128xf32>,
    return
  }
  func.func @transform_0(%arg0: i32, %arg1: i32) -> (i32, i32, i32) {
    %c0_i32 = arith.constant 0 : i32
    %c0_i32_0 = arith.constant 0 : i32
    return %arg0, %arg1, %c0_i32 : i32, i32, i32
  }
  func.func @transform_1(%arg0: i32, %arg1: i32) -> (i32, i32, i32, i32) {
    %c0_i32 = arith.constant 0 : i32
    %c0_i32_0 = arith.constant 0 : i32
    %c0_i32_1 = arith.constant 0 : i32
    return %arg0, %arg1, %c0_i32, %c0_i32_0 : i32, i32, i32, i32
  }
  func.func @transform_2(%arg0: i32, %arg1: i32) -> (i32, i32) {
    %c0_i32 = arith.constant 0 : i32
    %c0_i32_0 = arith.constant 0 : i32
    %c0_i32_1 = arith.constant 0 : i32
    return %c0_i32, %c0_i32_0 : i32, i32
  }
  func.func @transform_3(%arg0: i32, %arg1: i32) -> (i32, i32, i32) {
    %c0_i32 = arith.constant 0 : i32
    %c0_i32_0 = arith.constant 0 : i32
    return %arg0, %arg1, %c0_i32 : i32, i32, i32
  }
}

</mosaic_0001>

<bundles_post_ra>
// kernel: tpu_custom_call.1
= control target key start
LH: loop header
LB: loop body
LE: loop exit
PB: predicated region body
PF: predicated region fallthrough
CT: control target
= control target key end

     0   :  { %s1016_s0 = inlined_call_operand.hbm [shape: f32[2,16,128], index: 0, kind: input, shape index: {}]   ;;  %s1017_s1 = inlined_call_operand.hbm [shape: f32[2,2,2,128], index: 1, kind: input, shape index: {}]   ;;  %s1018_s2 = inlined_call_operand.hbm [shape: f32[10,128], index: 2, kind: input, shape index: {}]   ;;  %s1019_s3 = inlined_call_operand.hbm [shape: f32[2,16,128], index: 3, kind: output, shape index: {}]  }
   0x1   :  { %1025 = sst [smem:[#allocation18_spill]] %s1016_s0 }
   0x2   :  { %1026 = sst [smem:[#allocation19_spill]] %s1018_s2 }
   0x3   :  { %1027 = sst [smem:[#allocation20_spill]] %s1019_s3 }
   0x4   :  { %8 = vsyncpa [#allocation4], 0 }
   0x5   :  { %10 = vsyncpa [#allocation4 + $0x1], 0 }
   0x6   :  { %11 = vsyncpa [#allocation7], 0 }
   0x7   :  { %13 = vsyncpa [#allocation7 + $0x1], 0 }
   0x8   :  { %14 = vsyncpa [#allocation5], 0 }
   0x9   :  { %16 = vsyncpa [#allocation5 + $0x1], 0  ;;  %s810_s12 = smov 0   ;;  %s812_s13 = smov 0  }
   0xa   :  { %s814_s14 = smov 0   ;;  %s816_s15 = smov 0  }
   0xb   :  { %s818_s16 = smov 0   ;;  %s820_s17 = smov 0  }
   0xc   :  { %s822_s18 = smov 0   ;;  %s824_s19 = smov 0  }
   0xd LB: > { %1028 = sst [smem:[#allocation14_spill]] %s752_s12  ;;  %s851_s20 = sadd.s32 4294967295, %s780_s19   ;;  %s780_s19 = sphi %s824_s19, %s22_s19   ;;  %s776_s18 = sphi %s822_s18, %s1054_s18   ;;  %s772_s17 = sphi %s820_s17, %s1053_s17   ;;  %s768_s16 = sphi %s818_s16, %s1052_s16   ;;  %s764_s15 = sphi %s816_s15, %s1051_s15   ;;  %s760_s14 = sphi %s814_s14, %s1050_s14   ;;  %s756_s13 = sphi %s812_s13, %s1049_s13   ;;  %s752_s12 = sphi %s810_s12, %s1048_s12  }
   0xe   : > { %s476_s21 = sadd.s32 4294967294, %s780_s19   ;;  %p56_p0 = scmp.ne.s32.totalorder %s756_s13, %s752_s12 }
   0xf   : > { %p57_p1 = scmp.eq.s32.totalorder %s851_s20, 0  ;;  %p137_p3 = scmp.eq.s32.totalorder %s476_s21, 3 }
  0x10   : > { %p477_p5 = scmp.ge.s32.totalorder %s780_s19, 1  ;;  %p144_p7 = scmp.lt.s32.totalorder %s780_s19, 5 }
  0x11   : > { %p860_p4 = por %p57_p1, %p56_p0  ;;  %p865_p6 = por %p137_p3, %p56_p0 }
  0x12   : > { %p870_p8 = pnand %p477_p5, %p144_p7  ;;  %s782_s25 = smov [#allocation8]  }
  0x13   : > { %s1030_s23 = scalar_select %p865_p6, 1, 0 }
  0x14   : > { %s156_s26 = sshll.u32 %s782_s25, 4  ;;  %p506_p9 = pneg %p870_p8  ;;  %s157_s26 = int_to_ptr.vmem [resolvable:$true] %s156_s26 }
  0x15   : > { %1031 = sst [smem:[#allocation15_spill]] %s1030_s23  ;;  %s605_s27 = scalar_lea.vmem %s157_s26, 256 }
  0x16   : > { %p507_p10 = pnand %p506_p9, %p57_p1  ;;  %p606_p12 = scmp.ne.s32.totalorder %s157_s26, %s605_s27 }
  0x17   : > { %p613_p3 = scmp.lt.s32.totalorder %s157_s26, %s157_s26  ;;  %p614_p2 = scmp.lt.s32.totalorder %s605_s27, %s605_s27 }
  0x18   : > { %p596_p11 = pneg %p507_p10 }
  0x19   : > { %p615_p6 = por %p614_p2, %p613_p3 }
  0x1a   : > { %p608_p13 = pnand %p606_p12, %p596_p11 }
  0x1c   : > { %p609_p0 = pneg %p608_p13 }
  0x1e   : > { %p616_p5 = pnand %p615_p6, %p609_p0 }
  0x20   : > { %619 = shalt.err (!%p616_p5)
}
  0x21   : > { %s783_s28 = smov 128   ;;  %s784_s29 = smov 8  }
  0x22   : > { %s1033_s2 = sld [smem:[#allocation19_spill]]  ;;  %s31_s5 = sadd.s32 1, %s772_s17 }
  0x23   : > { %p32_p2 = scmp.ge.s32.totalorder %s31_s5, 2  ;;  %s34_s6 = sadd.s32 1, %s776_s18 }
  0x24   : > { %s43_s7 = sadd.s32 1, %s760_s14  ;;  %p50_p6 = scmp.ne.s32.totalorder %s760_s14, %s756_s13 }
  0x25   : > { %s1056_s5 = smov (%p32_p2, %s31_s5), 0  ;;  %s1058_s6 = smov (!%p32_p2, %s34_s6), %s776_s18 }
  0x26   : > { %1034 = sst [smem:[#allocation16_spill]] %s1056_s5  ;;  %s39_s8 = ssub.s32 %s772_s17, %s1056_s5 }
  0x27   : > { %p51_p7 = scmp.eq.s32.totalorder %s780_s19, 0  ;;  %p36_p9 = scmp.ge.s32.totalorder %s1058_s6, 2 }
  0x28   : > { %509 = dma.hbm_to_vmem [thread:$0]  (!%p507_p10), %s1033_s2, 256, %s157_s26, [#allocation7], %s783_s28, %s783_s28, %s784_s29  }
  0x29   : > { %p1035_p11 = scmp.eq.s32.totalorder %s851_s20, 3  ;;  %p898_p10 = por %p51_p7, %p50_p6 }
  0x2a   : > { %p522_p13 = scmp.lt.s32.totalorder %s780_s19, 4  ;;  %s1060_s6 = smov (%p36_p9, %s1058_s6), 0 }
  0x2b   : > { %p894_p12 = por %p1035_p11, %p50_p6  ;;  %1038 = sst [smem:[#allocation17_spill]] %s1060_s6 }
  0x2c   : > { %s906_s11 = sand.u32 1, %s760_s14   ;;  %s481_s21 = sshll.u32 %s776_s18, 1 }
  0x2d   : > { %s38_s25 = ssub.s32 %s776_s18, %s1060_s6  ;;  %s480_s27 = sshll.u32 %s906_s11, 3 }
  0x2e   : > { %s40_s26 = sor.u32 %s39_s8, %s38_s25  ;;  %s179_s28 = sadd.s32 %s772_s17, %s481_s21 }
  0x2f   : > { %p41_p0 = scmp.eq.s32.totalorder %s40_s26, 0  ;;  %s174_s29 = scalar_lea.vmem [#allocation3], %s480_s27 }
  0x30   : > { %s183_s30 = sshll.u32 %s174_s29, 4  ;;  %s482_s2 = sshll.u32 %s179_s28, 7  ;;  %s184_s30 = int_to_ptr.vmem [resolvable:$true] %s183_s30 }
  0x31   : > { %s914_s4 = scalar_select %p41_p0, %s760_s14, %s43_s7  }
  0x32   : > { %s1039_s0 = sld [smem:[#allocation18_spill]]  ;;  %p923_p3 = pnand %p522_p13, %p898_p10 }
  0x33   : > { %s190_s8 = sand.u32 1, %s780_s19   ;;  %s485_s21 = sshll.u32 %s179_s28, 5 }
  0x34   : > { %s171_s25 = scalar_lea.sflag [#allocation4], %s906_s11  ;;  %p622_p5 = pneg %p923_p3 }
  0x35   : > { %s633_s7 = scalar_lea.vmem %s184_s30, 128 }
  0x36   : > { %p634_p2 = scmp.ne.s32.totalorder %s184_s30, %s633_s7 }
  0x38   : > { %s181_s12 = scalar_lea.hbm %s1039_s0, %s482_s2  ;;  %p636_p6 = pnand %p634_p2, %p622_p5 }
  0x39   : > { %s785_s2 = smov [#allocation3]  }
  0x3a   : > { %p637_p7 = pneg %p636_p6  ;;  %s638_s23 = sshll.u32 %s785_s2, 4  ;;  %s639_s23 = int_to_ptr.vmem [resolvable:$false] %s638_s23 }
  0x3b   : > { %s640_s5 = scalar_lea.vmem %s639_s23, 256  ;;  %p641_p9 = scmp.lt.s32.totalorder %s184_s30, %s639_s23 }
  0x3c   : > { %p642_p11 = scmp.lt.s32.totalorder %s640_s5, %s633_s7 }
  0x3e   : > { %p643_p10 = por %p642_p11, %p641_p9 }
  0x40   : > { %p644_p13 = pnand %p643_p10, %p637_p7 }
  0x42   : > { %647 = shalt.err (!%p644_p13)
}
  0x43   : > { %513 = dma.hbm_to_vmem [thread:$0]  (!%p923_p3), %s181_s12, 128, %s184_s30, %s171_s25  }
  0x44   : > { %s483_s10 = sshll.u32 %s906_s11, 1  ;;  %s201_s28 = scalar_lea.hbm %s1017_s1, %s485_s21 }
  0x45   : > { %s194_s29 = scalar_lea.vmem [#allocation6], %s483_s10  ;;  %s191_s2 = scalar_lea.sflag [#allocation7], %s190_s8 }
  0x46   : > { %s203_s0 = sshll.u32 %s194_s29, 4  ;;  %s786_s7 = smov [#allocation6]   ;;  %s204_s0 = int_to_ptr.vmem [resolvable:$true] %s203_s0 }
  0x47   : > { %s661_s6 = scalar_lea.vmem %s204_s0, 32  ;;  %s666_s23 = sshll.u32 %s786_s7, 4  ;;  %s667_s23 = int_to_ptr.vmem [resolvable:$false] %s666_s23 }
  0x48   : > { %p662_p0 = scmp.ne.s32.totalorder %s204_s0, %s661_s6  ;;  %s668_s5 = scalar_lea.vmem %s667_s23, 64 }
  0x49   : > { %p669_p7 = scmp.lt.s32.totalorder %s204_s0, %s667_s23  ;;  %p670_p9 = scmp.lt.s32.totalorder %s668_s5, %s661_s6 }
  0x4a   : > { %p664_p2 = pnand %p662_p0, %p622_p5 }
  0x4b   : > { %p671_p11 = por %p670_p9, %p669_p7 }
  0x4c   : > { %p665_p6 = pneg %p664_p2 }
  0x4e   : > { %p672_p10 = pnand %p671_p11, %p665_p6 }
  0x50   : > { %675 = shalt.err (!%p672_p10)
}
  0x51   : > { %516 = dma.hbm_to_vmem [thread:$0]  (!%p923_p3), %s201_s28, 32, %s204_s0, %s191_s2  }
  0x52   : > { %212 = sbr.rel (%p870_p8) target bundleno = 250 (0xfa), region = 32  ;;  %s948_s12 = sand.u32 (!%p870_p8), 1, %s756_s13  }
  0x53   : > { %s487_s11 = sshll.u32 (!%p870_p8), %s948_s12, 3  ;;  %s215_s30 = scalar_lea.sflag (!%p870_p8), [#allocation4], %s948_s12 }
  0x54   : > { %s218_s6 = scalar_lea.vmem (!%p870_p8), [#allocation3], %s487_s11 }
  0x57   : > { %735 = dma.done.wait (%p860_p4), %s215_s30, 128  }
  0x58   : > { %737 = vsyncadd (%p860_p4), %s215_s30, 4294967168  ;;  %s223_s0 = sand.u32 1, %s851_s20   ;;  %s488_s3 = sshll.u32 %s948_s12, 1 }
  0x59   : > { %s224_s24 = scalar_lea.sflag [#allocation7], %s223_s0  ;;  %s227_s8 = scalar_lea.vmem [#allocation6], %s488_s3 }
  0x5a   : > { %739 = dma.done.wait (%p860_p4), %s224_s24, 32  }
  0x5b   : > { %741 = vsyncadd (%p860_p4), %s224_s24, 4294967264 }
  0x5c   : > { %743 = dma.done.wait (%p57_p1), [#allocation7], 256  }
  0x5d   : > { %745 = vsyncadd (%p57_p1), [#allocation7], 4294967040  ;;  %v259_v0 = vld [vmem:[%s227_s8] sm:$0x3]  ;;  %v261_v1 = vld [vmem:[%s218_s6] sm:$0xff]  ;;  %s787_s21 = smov 8   ;;  %v266_v4 = vlaneseq }
  0x5e   : > { %260 = vst [vmem:[#allocation2] sm:$0x1] %v259_v0  ;;  %262 = vst [vmem:[#allocation2 + $0x1] sm:$0xff] %v261_v1  ;;  %294 = vrot.lane.b32.xlu1 %v261_v1, %s787_s21  ;;  %s788_s25 = smov 120   ;;  %v264_v8 = vld [vmem:[#allocation8] sm:$0xff]  ;;  %s492_s20 = sshll.u32 %s768_s16, 1 }
  0x5f   : > { %263 = vst [vmem:[#allocation2 + $0x8] sm:$0x2] %v259_v0  ;;  %v267_v5 = vshrl.u32 %v266_v4, 7  ;;  %v265_v9 = vld [vmem:[#allocation8 + $0x8] sm:$0x3]  ;;  %s352_s22 = sadd.s32 %s764_s15, %s492_s20  ;;  %s258_s26 = scalar_lea.vmem [#allocation9], %s487_s11 }
  0x60   : > { %s493_s10 = sshll.u32 %s352_s22, 7  ;;  %s356_s27 = sshll.u32 %s258_s26, 4  ;;  %s357_s27 = int_to_ptr.vmem [resolvable:$true] %s356_s27 }
  0x61   : > { %v268_v6 = vsub.s32 1, %v267_v5  ;;  %v275_v7 = vsub.s32 0, %v267_v5  ;;  %v289_v10 = vsub.s32 2, %v267_v5  ;;  %v298_v13 = vsub.s32 3, %v267_v5  ;;  %s1041_s16 = sld [smem:[#allocation20_spill]]  ;;  %s341_s23 = scalar_lea.sflag [#allocation5], %s948_s12 }
  0x62   : > { %308 = vrot.lane.b32.xlu1 %v261_v1, %s788_s25  ;;  %v304_v14 = vsub.s32 4, %v267_v5  ;;  %v312_v22 = vsub.s32 5, %v267_v5  ;;  %v321_v25 = vsub.s32 6, %v267_v5  ;;  %v327_v26 = vsub.s32 7, %v267_v5  ;;  %s676_s5 = scalar_lea.vmem %s357_s27, 128  ;;  %s789_s15 = smov [#allocation9]  }
  0x63   : > { %v282_v11 = vrot.slane %v264_v8, %v268_v6  ;;  %v276_v12 = vrot.slane %v264_v8, %v275_v7  ;;  %v269_v15 = vrot.slane %v265_v9, %v268_v6  ;;  %v290_v17 = vrot.slane %v264_v8, %v289_v10  ;;  %p677_p1 = scmp.ne.s32.totalorder %s357_s27, %s676_s5  ;;  %s680_s30 = sshll.u32 %s789_s15, 4  ;;  %s681_s30 = int_to_ptr.vmem [resolvable:$false] %s680_s30 }
  0x64   : > { %v299_v21 = vrot.slane %v264_v8, %v298_v13  ;;  %v305_v23 = vrot.slane %v264_v8, %v304_v14  ;;  %v313_v31 = vrot.slane %v264_v8, %v312_v22  ;;  %v322_v35 = vrot.slane %v264_v8, %v321_v25  ;;  %s682_s6 = scalar_lea.vmem %s681_s30, 256  ;;  %p683_p3 = scmp.lt.s32.totalorder %s357_s27, %s681_s30 }
  0x65   : > { %v270_v2 = vld [vmem:[#allocation2] sm:$0xff]  ;;  %v328_v37 = vrot.slane %v264_v8, %v327_v26  ;;  %v336_v42 = vrot.slane %v265_v9, %v275_v7  ;;  %p678_p4 = pnand %p677_p1, %p894_p12  ;;  %p684_p5 = scmp.lt.s32.totalorder %s682_s6, %s676_s5 }
  0x66   : > { %v316_v3 = vld [vmem:[#allocation2 + $0x2] sm:$0xff]  ;;  %271 = vrot.lane.b32.xlu0 %v270_v2, %s787_s21  ;;  %v283_v19 = vmul.f32 %v282_v11, %v270_v2  ;;  %v306_v33 = vmul.f32 %v305_v23, %v261_v1 }
  0x67   : > { %331 = vrot.lane.b32.xlu1 %v316_v3, %s788_s25  ;;  %v329_v44 = vmul.f32 %v328_v37, %v316_v3  ;;  %s1042_s2 = smov %s1041_s16  ;;  %s354_s7 = scalar_lea.hbm %s1041_s16, %s493_s10 }
  0x68   : > { %p679_p8 = pneg %p678_p4  ;;  %p685_p13 = por %p684_p5, %p683_p3 }
  0x6a   : > { %285 = vrot.lane.b32.xlu0 %v270_v2, %s788_s25  ;;  %p686_p0 = pnand %p685_p13, %p679_p8 }
  0x6e   : > { %317 = vrot.lane.b32.xlu0 %v316_v3, %s787_s21 }
  0xd0   : > { %v295_v18 = vpop.permute.xlu1 %294 }
  0xd1   : > { %v300_v30 = vmul.f32 %v299_v21, %v295_v18 }
  0xd4   : > { %v309_v32 = vpop.permute.xlu1 %308 }
  0xd5   : > { %v314_v39 = vmul.f32 %v313_v31, %v309_v32 }
  0xd8   : > { %v272_v16 = vpop.permute.xlu0 %271 }
  0xd9   : > { %v277_v20 = vmul.f32 %v276_v12, %v272_v16  ;;  %v332_v43 = vpop.permute.xlu1 %331 }
  0xda   : > { %v337_v47 = vmul.f32 %v336_v42, %v332_v43 }
  0xdb   : > { %v278_v24 = vadd.f32 %v277_v20, %v269_v15 }
  0xdc   : > { %v286_v27 = vpop.permute.xlu0 %285 }
  0xdd   : > { %v284_v28 = vadd.f32 %v283_v19, %v278_v24  ;;  %v291_v29 = vmul.f32 %v290_v17, %v286_v27 }
  0xdf   : > { %v292_v34 = vadd.f32 %v291_v29, %v284_v28 }
  0xe0   : > { %v318_v36 = vpop.permute.xlu0 %317 }
  0xe1   : > { %v301_v38 = vadd.f32 %v300_v30, %v292_v34  ;;  %v323_v41 = vmul.f32 %v322_v35, %v318_v36 }
  0xe3   : > { %v307_v40 = vadd.f32 %v306_v33, %v301_v38 }
  0xe5   : > { %v315_v45 = vadd.f32 %v314_v39, %v307_v40 }
  0xe7   : > { %v324_v46 = vadd.f32 %v323_v41, %v315_v45 }
  0xe9   : > { %v330_v48 = vadd.f32 %v329_v44, %v324_v46 }
  0xeb   : > { %v338_v49 = vadd.f32 %v337_v47, %v330_v48 }
  0xed   : > { %339 = vst [vmem:[%s258_s26] sm:$0xff] %v338_v49 }
  0xee   : > { %689 = shalt.err (!%p686_p0)
}
  0xef   : > { %s690_s11 = scalar_lea.hbm %s354_s7, 128  ;;  %s694_s3 = scalar_lea.hbm %s1042_s2, 512 }
  0xf0   : > { %p691_p2 = scmp.ne.s32.totalorder %s354_s7, %s690_s11  ;;  %p695_p9 = scmp.lt.s32.totalorder %s354_s7, %s1042_s2 }
  0xf1   : > { %p696_p11 = scmp.lt.s32.totalorder %s694_s3, %s690_s11 }
  0xf2   : > { %p692_p6 = pnand %p691_p2, %p894_p12 }
  0xf3   : > { %p697_p10 = por %p696_p11, %p695_p9 }
  0xf4   : > { %p693_p7 = pneg %p692_p6 }
  0xf6   : > { %p698_p1 = pnand %p697_p10, %p693_p7 }
  0xf8   : > { %701 = shalt.err (!%p698_p1)
}
  0xf9   : > { %504 = dma.vmem_to_hbm [thread:$0]  (%p894_p12), %s357_s27, 128, %s354_s7, %s341_s23  }
  0xfa PF: > { %s1043_s21 = sld [smem:[#allocation14_spill]]  ;;  %p524_p4 = scmp.ge.s32.totalorder %s780_s19, 2 }
  0xfb   : > { %s1044_s25 = sld [smem:[#allocation15_spill]] }
 0x100   : > { %s368_s20 = sand.u32 1, %s1043_s21  }
 0x101   : > { %p1045_p8 = scmp.ne.s32.totalorder %s1044_s25, 0  ;;  %s369_s22 = scalar_lea.sflag [#allocation5], %s368_s20 }
 0x103   : > { %p518_p3 = pnand %p524_p4, %p1045_p8 }
 0x105   : > { %p519_p5 = pneg %p518_p3 }
 0x107   : > { %747 = dma.done.wait (%p519_p5), %s369_s22, 128  }
 0x108   : > { %749 = vsyncadd (%p519_p5), %s369_s22, 4294967168  ;;  %s22_s19 = sadd.s32 1, %s780_s19   ;;  %s1046_s9 = sld [smem:[#allocation16_spill]] }
 0x109   : > { %p19_p13 = scmp.ge.s32.totalorder %s22_s19, 6   ;;  %s1047_s10 = sld [smem:[#allocation17_spill]] }
 0x10a   : > { %s1048_s12 = smov %s756_s13  ;;  %s1049_s13 = smov %s760_s14 }
 0x10b   : > { %s1050_s14 = smov %s914_s4  ;;  %s1051_s15 = smov %s772_s17 }
 0x10c   : > { %s1052_s16 = smov %s776_s18  ;;  %21 = sbr.rel (!%p19_p13) target bundleno = 13 (0xd), region = 94 }
 0x10e   : > { %s1053_s17 = smov %s1046_s9 }
 0x10f   : > { %s1054_s18 = smov %s1047_s10 }
 0x111   :  { %374 = vsyncpa [#allocation4], 1 }
 0x112   :  { %376 = vsyncpa [#allocation4 + $0x1], 1 }
 0x113   :  { %377 = vsyncpa [#allocation7], 1 }
 0x114   :  { %379 = vsyncpa [#allocation7 + $0x1], 1 }
 0x115   :  { %380 = vsyncpa [#allocation5], 1 }
 0x116   :  { %382 = vsyncpa [#allocation5 + $0x1], 1 }

</bundles_post_ra>
